<compile_context>
chip_gen: v7x
topology: tpu7x:2x2x1
jax: 0.10.0
libtpu: 0.0.40
codegen_flags: <defaults>
</compile_context>

<pallas_src>
import jax
import jax.numpy as jnp
from jax.experimental import pallas as pl
from jax.experimental.pallas import tpu as pltpu

LANE = 128


def rnn1_kernel(x_ref,          # (S, I)
                wzrh_ref,       # (I, 3H)  = [Wz | Wr | Wh]
                bzrh_ref,       # (1, 3H)  = [Wz_b+Uz_b | Wr_b+Ur_b | Wh_b+Uh_b]
                uzr_ref,        # (H, 2H)  = [Uz | Ur]
                uh_ref,         # (H, H)
                fcw_ref,        # (H, P)   zero-padded to P = multiple of 128
                fcb_ref,        # (1, P)
                out_ref):       # (1, P)
    seq_len = x_ref.shape[0]          # compile-time constant
    hidden = uh_ref.shape[0]

    # Hoisted, step-independent input projections + (pre-summed) biases:
    # a single (S, I) x (I, 3H) MXU push instead of 3*S degenerate matmuls.
    gx = (jnp.dot(x_ref[...], wzrh_ref[...],
                  preferred_element_type=jnp.float32) + bzrh_ref[...])  # (S, 3H)
    gzr = gx[:, :2 * hidden]          # (S, 2H)  z|r input pre-activations
    gh = gx[:, 2 * hidden:]           # (S, H)   candidate input pre-activation

    uzr = uzr_ref[...]                # (H, 2H)
    uh = uh_ref[...]                  # (H, H)

    h = jnp.zeros((1, hidden), dtype=jnp.float32)
    # Fully unrolled recurrence with static slices (S is small and fixed).
    for k in range(seq_len):
        zr = jax.nn.sigmoid(
            gzr[k:k + 1, :]
            + jnp.dot(h, uzr, preferred_element_type=jnp.float32))      # (1, 2H)
        z = zr[:, :hidden]
        r = zr[:, hidden:]
        ht = jnp.tanh(
            gh[k:k + 1, :]
            + jnp.dot(h * r, uh, preferred_element_type=jnp.float32))   # (1, H)
        h = h + z * (ht - h)

    # output = fc(relu(h_final)); fc weights are lane-padded so this is a
    # full-lane (unmasked) store.
    out = (jnp.dot(jnp.maximum(h, 0.0), fcw_ref[...],
                   preferred_element_type=jnp.float32) + fcb_ref[...])
    out_ref[...] = out.astype(out_ref.dtype)


def prepare_fused_params(params, lane=LANE):
    """Fuse / pre-sum parameters outside the kernel (pure constant folding)."""
    output_size = params["fc_w"].shape[1]
    padded_out = ((output_size + lane - 1) // lane) * lane
    pad = padded_out - output_size

    w_zrh = jnp.concatenate(
        [params["Wz_w"], params["Wr_w"], params["Wh_w"]], axis=1)        # (I, 3H)
    b_zrh = jnp.concatenate(
        [params["Wz_b"] + params["Uz_b"],
         params["Wr_b"] + params["Ur_b"],
         params["Wh_b"] + params["Uh_b"]], axis=1)                        # (1, 3H)
    u_zr = jnp.concatenate([params["Uz_w"], params["Ur_w"]], axis=1)      # (H, 2H)
    u_h = params["Uh_w"]                                                  # (H, H)
    fc_w = jnp.pad(params["fc_w"], ((0, 0), (0, pad)))                    # (H, P)
    fc_b = jnp.pad(params["fc_b"], ((0, 0), (0, pad)))                    # (1, P)
    return w_zrh, b_zrh, u_zr, u_h, fc_w, fc_b


def rnn1_forward(x, params):
    """x: (1, S, I) float32 (PyTorch layout).  Returns (1, O)."""
    x2d = x[0]  # (S, I); the module only ever uses input[0, k]
    output_size = params["fc_b"].shape[-1]

    w_zrh, b_zrh, u_zr, u_h, fc_w, fc_b = prepare_fused_params(params)
    padded_out = fc_b.shape[-1]

    args = (x2d, w_zrh, b_zrh, u_zr, u_h, fc_w, fc_b)
    vmem = pl.BlockSpec(memory_space=pltpu.MemorySpace.VMEM)

    out_padded = pl.pallas_call(
        rnn1_kernel,
        out_shape=jax.ShapeDtypeStruct((1, padded_out), jnp.float32),
        in_specs=[vmem] * len(args),
        out_specs=vmem,
    )(*args)
    # TODO(synk): if this is ever called in a tight outer loop, add a grid axis
    # over independent sequences instead of per-call launches.
    return out_padded[:, :output_size]


def init_params(key, input_size, hidden_size, output_size):
    """PyTorch-style uniform(-1/sqrt(fan_in), 1/sqrt(fan_in)) init.

    All Linear weights stored as (in_features, out_features) so y = x @ W + b.
    """
    keys = jax.random.split(key, 14)
    ki = iter(range(14))

    def linear(fan_in, fan_out):
        bound = 1.0 / jnp.sqrt(jnp.float32(fan_in))
        w = jax.random.uniform(keys[next(ki)], (fan_in, fan_out),
                               minval=-bound, maxval=bound, dtype=jnp.float32)
        b = jax.random.uniform(keys[next(ki)], (1, fan_out),
                               minval=-bound, maxval=bound, dtype=jnp.float32)
        return w, b

    p = {}
    p["Wz_w"], p["Wz_b"] = linear(input_size, hidden_size)
    p["Wr_w"], p["Wr_b"] = linear(input_size, hidden_size)
    p["Wh_w"], p["Wh_b"] = linear(input_size, hidden_size)
    p["Uz_w"], p["Uz_b"] = linear(hidden_size, hidden_size)
    p["Ur_w"], p["Ur_b"] = linear(hidden_size, hidden_size)
    p["Uh_w"], p["Uh_b"] = linear(hidden_size, hidden_size)
    p["fc_w"], p["fc_b"] = linear(hidden_size, output_size)
    return p


def rnn1_reference(x, params):
    """Pure-JAX reference mirroring the PyTorch forward exactly (unfused params)."""
    hidden_size = params["Uz_w"].shape[0]
    h = jnp.zeros((1, hidden_size), dtype=jnp.float32)
    seq = x.shape[1]
    for k in range(seq):
        xk = x[0, k][None, :]
        z = jax.nn.sigmoid(xk @ params["Wz_w"] + params["Wz_b"]
                           + h @ params["Uz_w"] + params["Uz_b"])
        r = jax.nn.sigmoid(xk @ params["Wr_w"] + params["Wr_b"]
                           + h @ params["Ur_w"] + params["Ur_b"])
        ht = jnp.tanh(xk @ params["Wh_w"] + params["Wh_b"]
                      + (h * r) @ params["Uh_w"] + params["Uh_b"])
        h = h + z * (ht - h)
    return jnp.maximum(h, 0.0) @ params["fc_w"] + params["fc_b"]


if __name__ == "__main__":
    INPUT_SIZE = 16
    HIDDEN_SIZE = 32
    OUTPUT_SIZE = 8
    SEQ = 8

    key = jax.random.PRNGKey(0)
    k_x, k_p = jax.random.split(key)

    x = jax.random.normal(k_x, (1, SEQ, INPUT_SIZE), dtype=jnp.float32)
    params = init_params(k_p, INPUT_SIZE, HIDDEN_SIZE, OUTPUT_SIZE)

    out = rnn1_forward(x, params)
    out = jax.block_until_ready(out)

    ref = rnn1_reference(x, params)
    assert out.shape == (1, OUTPUT_SIZE)
    assert jnp.allclose(out, ref, atol=1e-5, rtol=1e-5), (out, ref)

    print("KERNEL_OK")
</pallas_src>

<mosaic_0001>
module attributes {stable_mosaic.version = 11 : i64} {
  func.func @rnn1_kernel(%arg0: memref<8x16xf32, #tpu.memory_space<vmem>>, %arg1: memref<16x96xf32, #tpu.memory_space<vmem>>, %arg2: memref<1x96xf32, #tpu.memory_space<vmem>>, %arg3: memref<32x64xf32, #tpu.memory_space<vmem>>, %arg4: memref<32x32xf32, #tpu.memory_space<vmem>>, %arg5: memref<32x128xf32, #tpu.memory_space<vmem>>, %arg6: memref<1x128xf32, #tpu.memory_space<vmem>>, %arg7: memref<1x128xf32, #tpu.memory_space<vmem>>) attributes {dimension_semantics = [], scalar_prefetch = 0 : i64, scratch_operands = 0 : i64, tpu.core_type = #tpu.core_type<tc>} {
    %c0 = arith.constant 0 : index
    %c0_0 = arith.constant 0 : index
    %0 = vector.load %arg0[%c0, %c0_0] : memref<8x16xf32, #tpu.memory_space<vmem>>, vector<8x16xf32>
    %c0_1 = arith.constant 0 : index
    %c0_2 = arith.constant 0 : index
    %1 = vector.load %arg1[%c0_1, %c0_2] : memref<16x96xf32, #tpu.memory_space<vmem>>, vector<16x96xf32>
    %cst = arith.constant dense<0.000000e+00> : vector<8x96xf32>
    %2 = tpu.matmul %0, %1, %cst {dimension_numbers = #tpu.dot_dimension_numbers<[1], [0], [0], [1], [0, 0, 1, 1], [], []>} : vector<8x16xf32>, vector<16x96xf32>, vector<8x96xf32> -> vector<8x96xf32>
    %c0_3 = arith.constant 0 : index
    %c0_4 = arith.constant 0 : index
    %3 = vector.load %arg2[%c0_3, %c0_4] : memref<1x96xf32, #tpu.memory_space<vmem>>, vector<1x96xf32>
    %4 = vector.broadcast %3 : vector<1x96xf32> to vector<8x96xf32>
    %5 = arith.addf %2, %4 : vector<8x96xf32>
    %6 = vector.extract_strided_slice %5 {offsets = [0, 0], sizes = [8, 64], strides = [1, 1]} : vector<8x96xf32> to vector<8x64xf32>
    %7 = vector.extract_strided_slice %5 {offsets = [0, 64], sizes = [8, 32], strides = [1, 1]} : vector<8x96xf32> to vector<8x32xf32>
    %c0_5 = arith.constant 0 : index
    %c0_6 = arith.constant 0 : index
    %8 = vector.load %arg3[%c0_5, %c0_6] : memref<32x64xf32, #tpu.memory_space<vmem>>, vector<32x64xf32>
    %c0_7 = arith.constant 0 : index
    %c0_8 = arith.constant 0 : index
    %9 = vector.load %arg4[%c0_7, %c0_8] : memref<32x32xf32, #tpu.memory_space<vmem>>, vector<32x32xf32>
    %cst_9 = arith.constant 0.000000e+00 : f32
    %10 = vector.broadcast %cst_9 : f32 to vector<1x32xf32>
    %11 = vector.extract_strided_slice %6 {offsets = [0, 0], sizes = [1, 64], strides = [1, 1]} : vector<8x64xf32> to vector<1x64xf32>
    %cst_10 = arith.constant dense<0.000000e+00> : vector<1x64xf32>
    %12 = tpu.matmul %10, %8, %cst_10 {dimension_numbers = #tpu.dot_dimension_numbers<[1], [0], [0], [1], [0, 0, 1, 1], [], []>} : vector<1x32xf32>, vector<32x64xf32>, vector<1x64xf32> -> vector<1x64xf32>
    %13 = arith.addf %11, %12 : vector<1x64xf32>
    %14 = arith.negf %13 : vector<1x64xf32>
    %15 = math.exp %14 : vector<1x64xf32>
    %cst_11 = arith.constant 1.000000e+00 : f32
    %16 = vector.broadcast %cst_11 : f32 to vector<1x64xf32>
    %17 = arith.addf %16, %15 : vector<1x64xf32>
    %18 = arith.divf %16, %17 : vector<1x64xf32>
    %19 = vector.extract_strided_slice %18 {offsets = [0, 0], sizes = [1, 32], strides = [1, 1]} : vector<1x64xf32> to vector<1x32xf32>
    %20 = vector.extract_strided_slice %18 {offsets = [0, 32], sizes = [1, 32], strides = [1, 1]} : vector<1x64xf32> to vector<1x32xf32>
    %21 = vector.extract_strided_slice %7 {offsets = [0, 0], sizes = [1, 32], strides = [1, 1]} : vector<8x32xf32> to vector<1x32xf32>
    %22 = arith.mulf %10, %20 : vector<1x32xf32>
    %cst_12 = arith.constant dense<0.000000e+00> : vector<1x32xf32>
    %23 = tpu.matmul %22, %9, %cst_12 {dimension_numbers = #tpu.dot_dimension_numbers<[1], [0], [0], [1], [0, 0, 1, 1], [], []>} : vector<1x32xf32>, vector<32x32xf32>, vector<1x32xf32> -> vector<1x32xf32>
    %24 = arith.addf %21, %23 : vector<1x32xf32>
    %25 = math.tanh %24 : vector<1x32xf32>
    %26 = arith.subf %25, %10 : vector<1x32xf32>
    %27 = arith.mulf %19, %26 : vector<1x32xf32>
    %28 = arith.addf %10, %27 : vector<1x32xf32>
    %29 = vector.extract_strided_slice %6 {offsets = [1, 0], sizes = [1, 64], strides = [1, 1]} : vector<8x64xf32> to vector<1x64xf32>
    %cst_13 = arith.constant dense<0.000000e+00> : vector<1x64xf32>
    %30 = tpu.matmul %28, %8, %cst_13 {dimension_numbers = #tpu.dot_dimension_numbers<[1], [0], [0], [1], [0, 0, 1, 1], [], []>} : vector<1x32xf32>, vector<32x64xf32>, vector<1x64xf32> -> vector<1x64xf32>
    %31 = arith.addf %29, %30 : vector<1x64xf32>
    %32 = arith.negf %31 : vector<1x64xf32>
    %33 = math.exp %32 : vector<1x64xf32>
    %cst_14 = arith.constant 1.000000e+00 : f32
    %34 = vector.broadcast %cst_14 : f32 to vector<1x64xf32>
    %35 = arith.addf %34, %33 : vector<1x64xf32>
    %36 = arith.divf %34, %35 : vector<1x64xf32>
    %37 = vector.extract_strided_slice %36 {offsets = [0, 0], sizes = [1, 32], strides = [1, 1]} : vector<1x64xf32> to vector<1x32xf32>
    %38 = vector.extract_strided_slice %36 {offsets = [0, 32], sizes = [1, 32], strides = [1, 1]} : vector<1x64xf32> to vector<1x32xf32>
    %39 = vector.extract_strided_slice %7 {offsets = [1, 0], sizes = [1, 32], strides = [1, 1]} : vector<8x32xf32> to vector<1x32xf32>
    %40 = arith.mulf %28, %38 : vector<1x32xf32>
    %cst_15 = arith.constant dense<0.000000e+00> : vector<1x32xf32>
    %41 = tpu.matmul %40, %9, %cst_15 {dimension_numbers = #tpu.dot_dimension_numbers<[1], [0], [0], [1], [0, 0, 1, 1], [], []>} : vector<1x32xf32>, vector<32x32xf32>, vector<1x32xf32> -> vector<1x32xf32>
    %42 = arith.addf %39, %41 : vector<1x32xf32>
    %43 = math.tanh %42 : vector<1x32xf32>
    %44 = arith.subf %43, %28 : vector<1x32xf32>
    %45 = arith.mulf %37, %44 : vector<1x32xf32>
    %46 = arith.addf %28, %45 : vector<1x32xf32>
    %47 = vector.extract_strided_slice %6 {offsets = [2, 0], sizes = [1, 64], strides = [1, 1]} : vector<8x64xf32> to vector<1x64xf32>
    %cst_16 = arith.constant dense<0.000000e+00> : vector<1x64xf32>
    %48 = tpu.matmul %46, %8, %cst_16 {dimension_numbers = #tpu.dot_dimension_numbers<[1], [0], [0], [1], [0, 0, 1, 1], [], []>} : vector<1x32xf32>, vector<32x64xf32>, vector<1x64xf32> -> vector<1x64xf32>
    %49 = arith.addf %47, %48 : vector<1x64xf32>
    %50 = arith.negf %49 : vector<1x64xf32>
    %51 = math.exp %50 : vector<1x64xf32>
    %cst_17 = arith.constant 1.000000e+00 : f32
    %52 = vector.broadcast %cst_17 : f32 to vector<1x64xf32>
    %53 = arith.addf %52, %51 : vector<1x64xf32>
    %54 = arith.divf %52, %53 : vector<1x64xf32>
    %55 = vector.extract_strided_slice %54 {offsets = [0, 0], sizes = [1, 32], strides = [1, 1]} : vector<1x64xf32> to vector<1x32xf32>
    %56 = vector.extract_strided_slice %54 {offsets = [0, 32], sizes = [1, 32], strides = [1, 1]} : vector<1x64xf32> to vector<1x32xf32>
    %57 = vector.extract_strided_slice %7 {offsets = [2, 0], sizes = [1, 32], strides = [1, 1]} : vector<8x32xf32> to vector<1x32xf32>
    %58 = arith.mulf %46, %56 : vector<1x32xf32>
    %cst_18 = arith.constant dense<0.000000e+00> : vector<1x32xf32>
    %59 = tpu.matmul %58, %9, %cst_18 {dimension_numbers = #tpu.dot_dimension_numbers<[1], [0], [0], [1], [0, 0, 1, 1], [], []>} : vector<1x32xf32>, vector<32x32xf32>, vector<1x32xf32> -> vector<1x32xf32>
    %60 = arith.addf %57, %59 : vector<1x32xf32>
    %61 = math.tanh %60 : vector<1x32xf32>
    %62 = arith.subf %61, %46 : vector<1x32xf32>
    %63 = arith.mulf %55, %62 : vector<1x32xf32>
    %64 = arith.addf %46, %63 : vector<1x32xf32>
    %65 = vector.extract_strided_slice %6 {offsets = [3, 0], sizes = [1, 64], strides = [1, 1]} : vector<8x64xf32> to vector<1x64xf32>
    %cst_19 = arith.constant dense<0.000000e+00> : vector<1x64xf32>
    %66 = tpu.matmul %64, %8, %cst_19 {dimension_numbers = #tpu.dot_dimension_numbers<[1], [0], [0], [1], [0, 0, 1, 1], [], []>} : vector<1x32xf32>, vector<32x64xf32>, vector<1x64xf32> -> vector<1x64xf32>
    %67 = arith.addf %65, %66 : vector<1x64xf32>
    %68 = arith.negf %67 : vector<1x64xf32>
    %69 = math.exp %68 : vector<1x64xf32>
    %cst_20 = arith.constant 1.000000e+00 : f32
    %70 = vector.broadcast %cst_20 : f32 to vector<1x64xf32>
    %71 = arith.addf %70, %69 : vector<1x64xf32>
    %72 = arith.divf %70, %71 : vector<1x64xf32>
    %73 = vector.extract_strided_slice %72 {offsets = [0, 0], sizes = [1, 32], strides = [1, 1]} : vector<1x64xf32> to vector<1x32xf32>
    %74 = vector.extract_strided_slice %72 {offsets = [0, 32], sizes = [1, 32], strides = [1, 1]} : vector<1x64xf32> to vector<1x32xf32>
    %75 = vector.extract_strided_slice %7 {offsets = [3, 0], sizes = [1, 32], strides = [1, 1]} : vector<8x32xf32> to vector<1x32xf32>
    %76 = arith.mulf %64, %74 : vector<1x32xf32>
    %cst_21 = arith.constant dense<0.000000e+00> : vector<1x32xf32>
    %77 = tpu.matmul %76, %9, %cst_21 {dimension_numbers = #tpu.dot_dimension_numbers<[1], [0], [0], [1], [0, 0, 1, 1], [], []>} : vector<1x32xf32>, vector<32x32xf32>, vector<1x32xf32> -> vector<1x32xf32>
    %78 = arith.addf %75, %77 : vector<1x32xf32>
    %79 = math.tanh %78 : vector<1x32xf32>
    %80 = arith.subf %79, %64 : vector<1x32xf32>
    %81 = arith.mulf %73, %80 : vector<1x32xf32>
    %82 = arith.addf %64, %81 : vector<1x32xf32>
    %83 = vector.extract_strided_slice %6 {offsets = [4, 0], sizes = [1, 64], strides = [1, 1]} : vector<8x64xf32> to vector<1x64xf32>
    %cst_22 = arith.constant dense<0.000000e+00> : vector<1x64xf32>
    %84 = tpu.matmul %82, %8, %cst_22 {dimension_numbers = #tpu.dot_dimension_numbers<[1], [0], [0], [1], [0, 0, 1, 1], [], []>} : vector<1x32xf32>, vector<32x64xf32>, vector<1x64xf32> -> vector<1x64xf32>
    %85 = arith.addf %83, %84 : vector<1x64xf32>
    %86 = arith.negf %85 : vector<1x64xf32>
    %87 = math.exp %86 : vector<1x64xf32>
    %cst_23 = arith.constant 1.000000e+00 : f32
    %88 = vector.broadcast %cst_23 : f32 to vector<1x64xf32>
    %89 = arith.addf %88, %87 : vector<1x64xf32>
    %90 = arith.divf %88, %89 : vector<1x64xf32>
    %91 = vector.extract_strided_slice %90 {offsets = [0, 0], sizes = [1, 32], strides = [1, 1]} : vector<1x64xf32> to vector<1x32xf32>
    %92 = vector.extract_strided_slice %90 {offsets = [0, 32], sizes = [1, 32], strides = [1, 1]} : vector<1x64xf32> to vector<1x32xf32>
    %93 = vector.extract_strided_slice %7 {offsets = [4, 0], sizes = [1, 32], strides = [1, 1]} : vector<8x32xf32> to vector<1x32xf32>
    %94 = arith.mulf %82, %92 : vector<1x32xf32>
    %cst_24 = arith.constant dense<0.000000e+00> : vector<1x32xf32>
    %95 = tpu.matmul %94, %9, %cst_24 {dimension_numbers = #tpu.dot_dimension_numbers<[1], [0], [0], [1], [0, 0, 1, 1], [], []>} : vector<1x32xf32>, vector<32x32xf32>, vector<1x32xf32> -> vector<1x32xf32>
    %96 = arith.addf %93, %95 : vector<1x32xf32>
    %97 = math.tanh %96 : vector<1x32xf32>
    %98 = arith.subf %97, %82 : vector<1x32xf32>
    %99 = arith.mulf %91, %98 : vector<1x32xf32>
    %100 = arith.addf %82, %99 : vector<1x32xf32>
    %101 = vector.extract_strided_slice %6 {offsets = [5, 0], sizes = [1, 64], strides = [1, 1]} : vector<8x64xf32> to vector<1x64xf32>
    %cst_25 = arith.constant dense<0.000000e+00> : vector<1x64xf32>
    %102 = tpu.matmul %100, %8, %cst_25 {dimension_numbers = #tpu.dot_dimension_numbers<[1], [0], [0], [1], [0, 0, 1, 1], [], []>} : vector<1x32xf32>, vector<32x64xf32>, vector<1x64xf32> -> vector<1x64xf32>
    %103 = arith.addf %101, %102 : vector<1x64xf32>
    %104 = arith.negf %103 : vector<1x64xf32>
    %105 = math.exp %104 : vector<1x64xf32>
    %cst_26 = arith.constant 1.000000e+00 : f32
    %106 = vector.broadcast %cst_26 : f32 to vector<1x64xf32>
    %107 = arith.addf %106, %105 : vector<1x64xf32>
    %108 = arith.divf %106, %107 : vector<1x64xf32>
    %109 = vector.extract_strided_slice %108 {offsets = [0, 0], sizes = [1, 32], strides = [1, 1]} : vector<1x64xf32> to vector<1x32xf32>
    %110 = vector.extract_strided_slice %108 {offsets = [0, 32], sizes = [1, 32], strides = [1, 1]} : vector<1x64xf32> to vector<1x32xf32>
    %111 = vector.extract_strided_slice %7 {offsets = [5, 0], sizes = [1, 32], strides = [1, 1]} : vector<8x32xf32> to vector<1x32xf32>
    %112 = arith.mulf %100, %110 : vector<1x32xf32>
    %cst_27 = arith.constant dense<0.000000e+00> : vector<1x32xf32>
    %113 = tpu.matmul %112, %9, %cst_27 {dimension_numbers = #tpu.dot_dimension_numbers<[1], [0], [0], [1], [0, 0, 1, 1], [], []>} : vector<1x32xf32>, vector<32x32xf32>, vector<1x32xf32> -> vector<1x32xf32>
    %114 = arith.addf %111, %113 : vector<1x32xf32>
    %115 = math.tanh %114 : vector<1x32xf32>
    %116 = arith.subf %115, %100 : vector<1x32xf32>
    %117 = arith.mulf %109, %116 : vector<1x32xf32>
    %118 = arith.addf %100, %117 : vector<1x32xf32>
    %119 = vector.extract_strided_slice %6 {offsets = [6, 0], sizes = [1, 64], strides = [1, 1]} : vector<8x64xf32> to vector<1x64xf32>
    %cst_28 = arith.constant dense<0.000000e+00> : vector<1x64xf32>
    %120 = tpu.matmul %118, %8, %cst_28 {dimension_numbers = #tpu.dot_dimension_numbers<[1], [0], [0], [1], [0, 0, 1, 1], [], []>} : vector<1x32xf32>, vector<32x64xf32>, vector<1x64xf32> -> vector<1x64xf32>
    %121 = arith.addf %119, %120 : vector<1x64xf32>
    %122 = arith.negf %121 : vector<1x64xf32>
    %123 = math.exp %122 : vector<1x64xf32>
    %cst_29 = arith.constant 1.000000e+00 : f32
    %124 = vector.broadcast %cst_29 : f32 to vector<1x64xf32>
    %125 = arith.addf %124, %123 : vector<1x64xf32>
    %126 = arith.divf %124, %125 : vector<1x64xf32>
    %127 = vector.extract_strided_slice %126 {offsets = [0, 0], sizes = [1, 32], strides = [1, 1]} : vector<1x64xf32> to vector<1x32xf32>
    %128 = vector.extract_strided_slice %126 {offsets = [0, 32], sizes = [1, 32], strides = [1, 1]} : vector<1x64xf32> to vector<1x32xf32>
    %129 = vector.extract_strided_slice %7 {offsets = [6, 0], sizes = [1, 32], strides = [1, 1]} : vector<8x32xf32> to vector<1x32xf32>
    %130 = arith.mulf %118, %128 : vector<1x32xf32>
    %cst_30 = arith.constant dense<0.000000e+00> : vector<1x32xf32>
    %131 = tpu.matmul %130, %9, %cst_30 {dimension_numbers = #tpu.dot_dimension_numbers<[1], [0], [0], [1], [0, 0, 1, 1], [], []>} : vector<1x32xf32>, vector<32x32xf32>, vector<1x32xf32> -> vector<1x32xf32>
    %132 = arith.addf %129, %131 : vector<1x32xf32>
    %133 = math.tanh %132 : vector<1x32xf32>
    %134 = arith.subf %133, %118 : vector<1x32xf32>
    %135 = arith.mulf %127, %134 : vector<1x32xf32>
    %136 = arith.addf %118, %135 : vector<1x32xf32>
    %137 = vector.extract_strided_slice %6 {offsets = [7, 0], sizes = [1, 64], strides = [1, 1]} : vector<8x64xf32> to vector<1x64xf32>
    %cst_31 = arith.constant dense<0.000000e+00> : vector<1x64xf32>
    %138 = tpu.matmul %136, %8, %cst_31 {dimension_numbers = #tpu.dot_dimension_numbers<[1], [0], [0], [1], [0, 0, 1, 1], [], []>} : vector<1x32xf32>, vector<32x64xf32>, vector<1x64xf32> -> vector<1x64xf32>
    %139 = arith.addf %137, %138 : vector<1x64xf32>
    %140 = arith.negf %139 : vector<1x64xf32>
    %141 = math.exp %140 : vector<1x64xf32>
    %cst_32 = arith.constant 1.000000e+00 : f32
    %142 = vector.broadcast %cst_32 : f32 to vector<1x64xf32>
    %143 = arith.addf %142, %141 : vector<1x64xf32>
    %144 = arith.divf %142, %143 : vector<1x64xf32>
    %145 = vector.extract_strided_slice %144 {offsets = [0, 0], sizes = [1, 32], strides = [1, 1]} : vector<1x64xf32> to vector<1x32xf32>
    %146 = vector.extract_strided_slice %144 {offsets = [0, 32], sizes = [1, 32], strides = [1, 1]} : vector<1x64xf32> to vector<1x32xf32>
    %147 = vector.extract_strided_slice %7 {offsets = [7, 0], sizes = [1, 32], strides = [1, 1]} : vector<8x32xf32> to vector<1x32xf32>
    %148 = arith.mulf %136, %146 : vector<1x32xf32>
    %cst_33 = arith.constant dense<0.000000e+00> : vector<1x32xf32>
    %149 = tpu.matmul %148, %9, %cst_33 {dimension_numbers = #tpu.dot_dimension_numbers<[1], [0], [0], [1], [0, 0, 1, 1], [], []>} : vector<1x32xf32>, vector<32x32xf32>, vector<1x32xf32> -> vector<1x32xf32>
    %150 = arith.addf %147, %149 : vector<1x32xf32>
    %151 = math.tanh %150 : vector<1x32xf32>
    %152 = arith.subf %151, %136 : vector<1x32xf32>
    %153 = arith.mulf %145, %152 : vector<1x32xf32>
    %154 = arith.addf %136, %153 : vector<1x32xf32>
    %cst_34 = arith.constant 0.000000e+00 : f32
    %155 = vector.broadcast %cst_34 : f32 to vector<1x32xf32>
    %156 = arith.maximumf %154, %155 : vector<1x32xf32>
    %c0_35 = arith.constant 0 : index
    %c0_36 = arith.constant 0 : index
    %157 = vector.load %arg5[%c0_35, %c0_36] : memref<32x128xf32, #tpu.memory_space<vmem>>, vector<32x128xf32>
    %cst_37 = arith.constant dense<0.000000e+00> : vector<1x128xf32>
    %158 = tpu.matmul %156, %157, %cst_37 {dimension_numbers = #tpu.dot_dimension_numbers<[1], [0], [0], [1], [0, 0, 1, 1], [], []>} : vector<1x32xf32>, vector<32x128xf32>, vector<1x128xf32> -> vector<1x128xf32>
    %c0_38 = arith.constant 0 : index
    %c0_39 = arith.constant 0 : index
    %159 = vector.load %arg6[%c0_38, %c0_39] : memref<1x128xf32, #tpu.memory_space<vmem>>, vector<1x128xf32>
    %160 = arith.addf %158, %159 : vector<1x128xf32>
    %c0_40 = arith.constant 0 : index
    %c0_41 = arith.constant 0 : index
    %161 = vector.load %arg7[%c0_40, %c0_41] : memref<1x128xf32, #tpu.memory_space<vmem>>, vector<1x128xf32>
    tpu.vector_store %arg7[%c0_40, %c0_41], %160 {strides = array<i32>} : memref<1x128xf32, #tpu.memory_space<vmem>>, vector<1x128xf32>,
    return
  }
}

</mosaic_0001>

<bundles_post_ra>
// kernel: tpu_custom_call.1
= control target key start
LH: loop header
LB: loop body
LE: loop exit
PB: predicated region body
PF: predicated region fallthrough
CT: control target
= control target key end

     0   :  { %12 = vsyncpa [#allocation3], 0  ;;  %s2666_s0 = inlined_call_operand.hbm [shape: f32[8,16], index: 0, kind: input, shape index: {}]   ;;  %s2667_s1 = inlined_call_operand.hbm [shape: f32[16,96], index: 1, kind: input, shape index: {}]   ;;  %s2668_s2 = inlined_call_operand.vmem [shape: f32[1,96], index: 2, kind: input, shape index: {}]   ;;  %s2669_s3 = inlined_call_operand.hbm [shape: f32[32,64], index: 3, kind: input, shape index: {}]   ;;  %s2670_s4 = inlined_call_operand.hbm [shape: f32[32,32], index: 4, kind: input, shape index: {}]   ;;  %s2671_s5 = inlined_call_operand.hbm [shape: f32[32,128], index: 5, kind: input, shape index: {}]   ;;  %s2672_s6 = inlined_call_operand.vmem [shape: f32[1,128], index: 6, kind: input, shape index: {}]   ;;  %s2673_s7 = inlined_call_operand.hbm [shape: f32[1,128], index: 7, kind: output, shape index: {}]  }
   0x1   :  { %13 = vsyncpa [#allocation6], 0 }
   0x2   :  { %14 = vsyncpa [#allocation9], 0 }
   0x3   :  { %15 = vsyncpa [#allocation4], 0  ;;  %s2346_s24 = smov [#allocation5]   ;;  %s2206_s28 = scalar_lea.hbm %s2667_s1, 256 }
   0x4   :  { %s31_s25 = sshll.u32 %s2346_s24, 4  ;;  %p2207_p0 = scmp.ne.s32.totalorder %s2667_s1, %s2206_s28  ;;  %s32_s25 = int_to_ptr.vmem [resolvable:$true] %s31_s25 }
   0x5   :  { %p2210_p1 = scmp.lt.u32.totalorder %s2206_s28, %s2667_s1 }
   0x7   :  { %p2212_p2 = pnand %p2210_p1, %p2207_p0 }
   0x9   :  { %2215 = shalt.err (!%p2212_p2)
}
   0xa   :  { %s2216_s10 = scalar_lea.vmem %s32_s25, 256  ;;  %p2221_p4 = scmp.lt.s32.totalorder %s32_s25, %s32_s25 }
   0xb   :  { %p2217_p3 = scmp.ne.s32.totalorder %s32_s25, %s2216_s10  ;;  %p2222_p5 = scmp.lt.s32.totalorder %s2216_s10, %s2216_s10 }
   0xd   :  { %p2223_p6 = por %p2222_p5, %p2221_p4 }
   0xf   :  { %p2224_p7 = pnand %p2223_p6, %p2217_p3 }
  0x11   :  { %2227 = shalt.err (!%p2224_p7)
}
  0x12   :  { %s2347_s11 = smov 128   ;;  %s2348_s12 = smov 8  }
  0x13   :  { %37 = dma.hbm_to_vmem [thread:$0]  %s2667_s1, 256, %s32_s25, [#allocation6], %s2347_s11, %s2347_s11, %s2348_s12  }
  0x14   :  { %s2349_s15 = smov [#allocation8]   ;;  %s2350_s17 = smov [#allocation2]  }
  0x15   :  { %s57_s16 = sshll.u32 %s2349_s15, 4  ;;  %s22_s18 = sshll.u32 %s2350_s17, 4  ;;  %s58_s16 = int_to_ptr.vmem [resolvable:$true] %s57_s16  ;;  %s23_s18 = int_to_ptr.vmem [resolvable:$true] %s22_s18 }
  0x16   :  { %s2228_s21 = scalar_lea.hbm %s2670_s4, 512 }
  0x17   :  { %p2229_p8 = scmp.ne.s32.totalorder %s2670_s4, %s2228_s21  ;;  %p2232_p9 = scmp.lt.u32.totalorder %s2228_s21, %s2670_s4 }
  0x19   :  { %p2234_p10 = pnand %p2232_p9, %p2229_p8 }
  0x1b   :  { %2237 = shalt.err (!%p2234_p10)
}
  0x1c   :  { %s2238_s1 = scalar_lea.vmem %s58_s16, 512  ;;  %p2243_p12 = scmp.lt.s32.totalorder %s58_s16, %s58_s16 }
  0x1d   :  { %p2239_p11 = scmp.ne.s32.totalorder %s58_s16, %s2238_s1  ;;  %p2244_p13 = scmp.lt.s32.totalorder %s2238_s1, %s2238_s1 }
  0x1f   :  { %p2245_p0 = por %p2244_p13, %p2243_p12 }
  0x21   :  { %p2246_p1 = pnand %p2245_p0, %p2239_p11 }
  0x23   :  { %2249 = shalt.err (!%p2246_p1)
}
  0x24   :  { %63 = dma.hbm_to_vmem [thread:$0]  %s2670_s4, 512, %s58_s16, [#allocation9], %s2347_s11, %s2347_s11, %s2348_s12  }
  0x25   :  { %s2250_s30 = scalar_lea.hbm %s2666_s0, 128 }
  0x26   :  { %p2251_p2 = scmp.ne.s32.totalorder %s2666_s0, %s2250_s30  ;;  %p2254_p3 = scmp.lt.u32.totalorder %s2250_s30, %s2666_s0 }
  0x28   :  { %p2256_p4 = pnand %p2254_p3, %p2251_p2 }
  0x2a   :  { %2259 = shalt.err (!%p2256_p4)
}
  0x2b   :  { %s2260_s14 = scalar_lea.vmem %s23_s18, 128  ;;  %p2265_p6 = scmp.lt.s32.totalorder %s23_s18, %s23_s18 }
  0x2c   :  { %p2261_p5 = scmp.ne.s32.totalorder %s23_s18, %s2260_s14  ;;  %p2266_p7 = scmp.lt.s32.totalorder %s2260_s14, %s2260_s14 }
  0x2e   :  { %p2267_p8 = por %p2266_p7, %p2265_p6 }
  0x30   :  { %p2268_p9 = pnand %p2267_p8, %p2261_p5 }
  0x32   :  { %2271 = shalt.err (!%p2268_p9)
}
  0x33   :  { %25 = dma.hbm_to_vmem [thread:$0]  %s2666_s0, 128, %s23_s18, [#allocation3]  }
  0x34   :  { %s2351_s16 = smov [#allocation7]   ;;  %s2352_s19 = smov [#allocation10]  }
  0x35   :  { %s45_s17 = sshll.u32 %s2351_s16, 4  ;;  %s69_s20 = sshll.u32 %s2352_s19, 4  ;;  %s46_s17 = int_to_ptr.vmem [resolvable:$true] %s45_s17  ;;  %s70_s20 = int_to_ptr.vmem [resolvable:$true] %s69_s20 }
  0x36   :  { %s2272_s23 = scalar_lea.hbm %s2669_s3, 512 }
  0x37   :  { %p2273_p10 = scmp.ne.s32.totalorder %s2669_s3, %s2272_s23  ;;  %p2276_p11 = scmp.lt.u32.totalorder %s2272_s23, %s2669_s3 }
  0x39   :  { %p2278_p12 = pnand %p2276_p11, %p2273_p10 }
  0x3b   :  { %2281 = shalt.err (!%p2278_p12)
}
  0x3c   :  { %s2282_s0 = scalar_lea.vmem %s46_s17, 512  ;;  %p2287_p0 = scmp.lt.s32.totalorder %s46_s17, %s46_s17 }
  0x3d   :  { %p2283_p13 = scmp.ne.s32.totalorder %s46_s17, %s2282_s0  ;;  %p2288_p1 = scmp.lt.s32.totalorder %s2282_s0, %s2282_s0 }
  0x3f   :  { %p2289_p2 = por %p2288_p1, %p2287_p0 }
  0x41   :  { %p2290_p3 = pnand %p2289_p2, %p2283_p13 }
  0x43   :  { %2293 = shalt.err (!%p2290_p3)
}
  0x44   :  { %51 = dma.hbm_to_vmem [thread:$0]  %s2669_s3, 512, %s46_s17, [#allocation6], %s2347_s11, %s2347_s11, %s2348_s12  }
  0x45   :  { %s2294_s30 = scalar_lea.hbm %s2671_s5, 512 }
  0x46   :  { %p2295_p4 = scmp.ne.s32.totalorder %s2671_s5, %s2294_s30  ;;  %p2298_p5 = scmp.lt.u32.totalorder %s2294_s30, %s2671_s5 }
  0x48   :  { %p2300_p6 = pnand %p2298_p5, %p2295_p4 }
  0x4a   :  { %2303 = shalt.err (!%p2300_p6)
}
  0x4b   :  { %s2304_s14 = scalar_lea.vmem %s70_s20, 512  ;;  %p2309_p8 = scmp.lt.s32.totalorder %s70_s20, %s70_s20 }
  0x4c   :  { %p2305_p7 = scmp.ne.s32.totalorder %s70_s20, %s2304_s14  ;;  %p2310_p9 = scmp.lt.s32.totalorder %s2304_s14, %s2304_s14 }
  0x4e   :  { %p2311_p10 = por %p2310_p9, %p2309_p8 }
  0x50   :  { %p2312_p11 = pnand %p2311_p10, %p2305_p7 }
  0x52   :  { %2315 = shalt.err (!%p2312_p11)
}
  0x53   :  { %75 = dma.hbm_to_vmem [thread:$0]  %s2671_s5, 512, %s70_s20, [#allocation9], %s2347_s11, %s2347_s11, %s2348_s12  }
  0x54   :  { %2338 = dma.done.wait [#allocation3], 128  }
  0x55   :  { %2339 = vsyncadd [#allocation3], 4294967168 }
  0x56   :  { %2340 = dma.done.wait [#allocation6], 768  }
  0x57   :  { %2341 = vsyncadd [#allocation6], 4294966528 }
  0x58   :  { %2342 = dma.done.wait [#allocation9], 1024  }
  0x59   :  { %2343 = vsyncadd [#allocation9], 4294966272  ;;  %v2353_v0 = vmov 0.0|0.0   ;;  %vm2354_vm0 = vmmov 0   ;;  %v2355_v1 = vmov 0.0   ;;  %v177_v2 = vld [vmem:[#allocation7] sm:$0xff] }
  0x5a   :  { %2043 = vmatprep.subr.bf16.mxu1 %v2353_v0  ;;  %2040 = vmatprep.subr.bf16.mxu0 %v2353_v0  ;;  %v178_v3 = vld [vmem:[#allocation7 + $0x8] sm:$0xff]  ;;  %v94_v4 = vld [vmem:[#allocation5] sm:$0xff]  ;;  %v95_v6 = vld [vmem:[#allocation5 + $0x8] sm:$0xff]  ;;  %vm103_vm1 = vcmask 130048   ;;  %s2356_s12 = smov 96   ;;  %vm185_vm2 = vcmask 261120  }
  0x5b   :  { %1850 = vmatprep.mubr.msk.f32.mxu0 %vm2354_vm0, %v2355_v1  ;;  %1861 = vmatprep.mubr.msk.f32.mxu1 %vm2354_vm0, %v2355_v1  ;;  %v2477_v5 = vpack.c.bf16 %v178_v3, %v177_v2  ;;  %v179_v7 = vld [vmem:[#allocation7 + $0x10] sm:$0xff]  ;;  %v2041_v8 = vpack.c.bf16 %v95_v6, %v94_v4  ;;  %v180_v9 = vld [vmem:[#allocation7 + $0x18] sm:$0xff]  ;;  %v93_v11 = vld [vmem:[#allocation2] sm:$0xff]  ;;  %s2358_s17 = smov [#allocation11]  }
  0x5c   :  { %v2480_v10 = vpack.c.bf16 %v180_v9, %v179_v7  ;;  %v181_v12 = vld [vmem:[#allocation8] sm:$0xff]  ;;  %v182_v13 = vld [vmem:[#allocation8 + $0x8] sm:$0xff]  ;;  %v183_v14 = vld [vmem:[#allocation8 + $0x10] sm:$0xff]  ;;  %s1721_s19 = sshll.u32 %s2358_s17, 4  ;;  %s1722_s19 = int_to_ptr.vmem [resolvable:$true] %s1721_s19 }
  0x5d   :  { %2045 = vmatpush3.bf16.msra.mxu1 %v2477_v5  ;;  %2042 = vmatpush3.bf16.msra.mxu0 %v2041_v8  ;;  %v2495_v15 = vpack.c.bf16 %v182_v13, %v181_v12  ;;  %v184_v16 = vld [vmem:[#allocation8 + $0x18] sm:$0xff]  ;;  %v1732_v18 = vld [vmem:[%s2668_s2] ss:$0 sm:$0xff]  ;;  %s2357_s2 = smov 64   ;;  %s2316_s20 = scalar_lea.vmem %s1722_s19, 16 }
  0x5e   :  { %2046 = vmatprep.subr.bf16.mxu1 %v2353_v0  ;;  %2049 = vmatprep.subr.bf16.mxu0 %v2353_v0  ;;  %v2498_v17 = vpack.c.bf16 %v184_v16, %v183_v14  ;;  %p2317_p12 = scmp.ne.s32.totalorder %s1722_s19, %s2316_s20  ;;  %s2320_s21 = scalar_lea.vmem %s1722_s19, 32 }
  0x5f   :  { %p2321_p13 = scmp.lt.s32.totalorder %s1722_s19, %s1722_s19  ;;  %p2322_p0 = scmp.lt.s32.totalorder %s2320_s21, %s2316_s20 }
  0x60   :  { %1851 = vmatmul.mubr.msk.f32.vlgmr.msra.gmra.mrb[0].mxu0 %vm103_vm1, %v93_v11 }
  0x61   :  { %2048 = vmatpush3.bf16.msra.mxu1 %v2480_v10  ;;  %1872 = vmatprep.mubr.msk.f32.mxu0 %vm2354_vm0, %v2355_v1  ;;  %p2323_p1 = por %p2322_p0, %p2321_p13 }
  0x62   :  { %2055 = vmatprep.subr.bf16.mxu1 %v2353_v0  ;;  %2051 = vmatpush3.bf16.msra.mxu0 %v2495_v15 }
  0x63   :  { %2052 = vmatprep.subr.bf16.mxu0 %v2353_v0  ;;  %p2324_p2 = pnand %p2323_p1, %p2317_p12 }
  0x64   :  { %1862 = vmatmul.mubr.f32.vlgmr.msra.gmra.mrb[0].mxu1 %v2355_v1 }
  0x65   :  { %2057 = vmatpush3.bf16.msra.mxu1 %v2477_v5  ;;  %1883 = vmatprep.mubr.msk.f32.mxu1 %vm2354_vm0, %v2355_v1 }
  0x66   :  { %2058 = vmatprep.subr.bf16.mxu1 %v2353_v0  ;;  %2054 = vmatpush3.bf16.msra.mxu0 %v2498_v17 }
  0x67   :  { %2061 = vmatprep.subr.bf16.mxu0 %v2353_v0 }
  0x69   :  { %2060 = vmatpush3.bf16.msra.mxu1 %v2480_v10 }
  0x6a   :  { %2067 = vmatprep.subr.bf16.mxu1 %v2353_v0 }
 0x133   :  { %v173_v19 = vpop.f32.mrb[0].mxu0 }
 0x134   :  { %v2506_v20 = vadd.f32 %v1732_v18, %v173_v19  ;;  %v1852_v21 = vpop.f32.mrb[1].mxu0 }
 0x137   :  { %v255_v22 = vpop.f32.mrb[0].mxu1 }
 0x138   :  { %v259_v23 = vadd.f32 %v255_v22, %v2506_v20  ;;  %v1863_v24 = vpop.f32.mrb[1].mxu1 }
 0x13a   :  { %v1734_v25 = vmul.f32 -1.442695, %v259_v23 }
 0x13c   :  { %2158 = vpow2.f32 %v1734_v25 }
 0x146   :  { %v2159_v26 = vpop.eup %2158 }
 0x147   :  { %v263_v27 = vadd.f32 1.0, %v2159_v26 }
 0x149   :  { %2160 = vrcp.f32 %v263_v27 }
 0x153   :  { %v2161_v28 = vpop.eup %2160 }
 0x154   :  { %v266_v29 = vmul.f32 0.0, %v2161_v28 }
 0x156   :  { %268 = vrot.lane.b32.xlu0 %v266_v29, %s2356_s12 }
 0x1c8   :  { %v269_v30 = vpop.permute.xlu0 %268 }
 0x1c9   :  { %1873 = vmatmul.mubr.msk.f32.vlgmr.msra.gmra.mrb[2].mxu0 %vm185_vm2, %v269_v30 }
 0x1ca   :  { %2063 = vmatpush3.bf16.msra.mxu0 %v2495_v15  ;;  %1894 = vmatprep.mubr.msk.f32.mxu0 %vm2354_vm0, %v2355_v1 }
 0x1cb   :  { %2064 = vmatprep.subr.bf16.mxu0 %v2353_v0 }
 0x1ce   :  { %2066 = vmatpush3.bf16.msra.mxu0 %v2498_v17 }
 0x1cf   :  { %2073 = vmatprep.subr.bf16.mxu0 %v2353_v0 }
 0x29c   :  { %v338_v31 = vpop.f32.mrb[2].mxu0 }
 0x29d   :  { %343 = vrot.lane.b32.xlu0 %v338_v31, %s2357_s2  ;;  %v1874_v32 = vpop.f32.mrb[3].mxu0 }
 0x30f   :  { %v344_v33 = vpop.permute.xlu0 %343 }
 0x310   :  { %v346_v34 = vadd.f32 %v344_v33, %v2506_v20 }
 0x312   :  { %2162 = vtanh.f32 %v346_v34 }
 0x31c   :  { %v2163_v35 = vpop.eup %2162 }
 0x31d   :  { %349 = vrot.lane.b32.xlu1 %v2163_v35, %s2357_s2 }
 0x38f   :  { %v350_v36 = vpop.permute.xlu1 %349 }
 0x390   :  { %v352_v37 = vmul.f32 %v2161_v28, %v350_v36 }
 0x392   :  { %1884 = vmatmul.mubr.msk.f32.vlgmr.msra.gmra.mrb[2].mxu1 %vm185_vm2, %v352_v37  ;;  %v523_v47 = vrot.slane %v352_v37, 7 }
 0x393   :  { %2069 = vmatpush3.bf16.msra.mxu1 %v2477_v5  ;;  %1905 = vmatprep.mubr.msk.f32.mxu1 %vm2354_vm0, %v2355_v1 }
 0x394   :  { %2070 = vmatprep.subr.bf16.mxu1 %v2353_v0 }
 0x397   :  { %2072 = vmatpush3.bf16.msra.mxu1 %v2480_v10 }
 0x398   :  { %2079 = vmatprep.subr.bf16.mxu1 %v2353_v0 }
 0x465   :  { %v423_v38 = vpop.f32.mrb[2].mxu1 }
 0x466   :  { %v428_v39 = vrot.slane %v423_v38, 7  ;;  %v1885_v40 = vpop.f32.mrb[3].mxu1 }
 0x468   :  { %v430_v41 = vadd.f32 %v428_v39, %v2506_v20 }
 0x46a   :  { %v1737_v42 = vmul.f32 -1.442695, %v430_v41 }
 0x46c   :  { %2164 = vpow2.f32 %v1737_v42 }
 0x476   :  { %v2165_v43 = vpop.eup %2164 }
 0x477   :  { %v434_v44 = vadd.f32 1.0, %v2165_v43 }
 0x479   :  { %2166 = vrcp.f32 %v434_v44 }
 0x483   :  { %v2167_v45 = vpop.eup %2166 }
 0x484   :  { %v438_v46 = vrot.slane %v2167_v45, 1 }
 0x486   :  { %439 = vrot.lane.b32.xlu1 %v438_v46, %s2356_s12 }
 0x48a   :  { %524 = vrot.lane.b32.xlu1 %v523_v47, %s2357_s2 }
 0x4f8   :  { %v440_v48 = vpop.permute.xlu1 %439 }
 0x4f9   :  { %v442_v49 = vmul.f32 %v440_v48, %v352_v37 }
 0x4fb   :  { %1895 = vmatmul.mubr.msk.f32.vlgmr.msra.gmra.mrb[4].mxu0 %vm185_vm2, %v442_v49 }
 0x4fc   :  { %2075 = vmatpush3.bf16.msra.mxu0 %v2495_v15  ;;  %1916 = vmatprep.mubr.msk.f32.mxu0 %vm2354_vm0, %v2355_v1  ;;  %v525_v56 = vpop.permute.xlu1 %524 }
 0x4fd   :  { %2076 = vmatprep.subr.bf16.mxu0 %v2353_v0 }
 0x500   :  { %2078 = vmatpush3.bf16.msra.mxu0 %v2498_v17 }
 0x501   :  { %2085 = vmatprep.subr.bf16.mxu0 %v2353_v0 }
 0x5ce   :  { %v512_v50 = vpop.f32.mrb[4].mxu0 }
 0x5cf   :  { %v517_v51 = vrot.slane %v512_v50, 7  ;;  %v1896_v52 = vpop.f32.mrb[5].mxu0 }
 0x5d1   :  { %518 = vrot.lane.b32.xlu0 %v517_v51, %s2357_s2 }
 0x643   :  { %v519_v53 = vpop.permute.xlu0 %518 }
 0x644   :  { %v521_v54 = vadd.f32 %v519_v53, %v2506_v20 }
 0x646   :  { %2168 = vtanh.f32 %v521_v54 }
 0x650   :  { %v2169_v55 = vpop.eup %2168 }
 0x651   :  { %v527_v57 = vsub.f32 %v2169_v55, %v525_v56 }
 0x653   :  { %529 = vrot.lane.b32.xlu0 %v527_v57, %s2357_s2 }
 0x6c5   :  { %v530_v58 = vpop.permute.xlu0 %529 }
 0x6c6   :  { %v532_v59 = vmul.f32 %v2167_v45, %v530_v58 }
 0x6c8   :  { %v534_v60 = vrot.slane %v532_v59, 1 }
 0x6ca   :  { %v536_v61 = vadd.f32 %v534_v60, %v352_v37 }
 0x6cc   :  { %1906 = vmatmul.mubr.msk.f32.vlgmr.msra.gmra.mrb[4].mxu1 %vm185_vm2, %v536_v61  ;;  %v706_v11 = vrot.slane %v536_v61, 6 }
 0x6cd   :  { %2081 = vmatpush3.bf16.msra.mxu1 %v2477_v5  ;;  %1927 = vmatprep.mubr.msk.f32.mxu1 %vm2354_vm0, %v2355_v1 }
 0x6ce   :  { %2082 = vmatprep.subr.bf16.mxu1 %v2353_v0 }
 0x6d1   :  { %2084 = vmatpush3.bf16.msra.mxu1 %v2480_v10 }
 0x6d2   :  { %2091 = vmatprep.subr.bf16.mxu1 %v2353_v0 }
 0x79f   :  { %v606_v62 = vpop.f32.mrb[4].mxu1 }
 0x7a0   :  { %v611_v63 = vrot.slane %v606_v62, 6  ;;  %v1907_v2 = vpop.f32.mrb[5].mxu1 }
 0x7a2   :  { %v613_v3 = vadd.f32 %v611_v63, %v2506_v20 }
 0x7a4   :  { %v1740_v4 = vmul.f32 -1.442695, %v613_v3 }
 0x7a6   :  { %2170 = vpow2.f32 %v1740_v4 }
 0x7b0   :  { %v2171_v6 = vpop.eup %2170 }
 0x7b1   :  { %v617_v7 = vadd.f32 1.0, %v2171_v6 }
 0x7b3   :  { %2172 = vrcp.f32 %v617_v7 }
 0x7bd   :  { %v2173_v8 = vpop.eup %2172 }
 0x7be   :  { %v621_v9 = vrot.slane %v2173_v8, 2 }
 0x7c0   :  { %622 = vrot.lane.b32.xlu1 %v621_v9, %s2356_s12 }
 0x7c4   :  { %707 = vrot.lane.b32.xlu1 %v706_v11, %s2357_s2 }
 0x832   :  { %v623_v12 = vpop.permute.xlu1 %622 }
 0x833   :  { %v625_v13 = vmul.f32 %v623_v12, %v536_v61 }
 0x835   :  { %1917 = vmatmul.mubr.msk.f32.vlgmr.msra.gmra.mrb[6].mxu0 %vm185_vm2, %v625_v13 }
 0x836   :  { %2087 = vmatpush3.bf16.msra.mxu0 %v2495_v15  ;;  %1938 = vmatprep.mubr.msk.f32.mxu0 %vm2354_vm0, %v2355_v1  ;;  %v708_v23 = vpop.permute.xlu1 %707 }
 0x837   :  { %2088 = vmatprep.subr.bf16.mxu0 %v2353_v0 }
 0x83a   :  { %2090 = vmatpush3.bf16.msra.mxu0 %v2498_v17 }
 0x83b   :  { %2097 = vmatprep.subr.bf16.mxu0 %v2353_v0 }
 0x908   :  { %v695_v14 = vpop.f32.mrb[6].mxu0 }
 0x909   :  { %v700_v16 = vrot.slane %v695_v14, 6  ;;  %v1918_v18 = vpop.f32.mrb[7].mxu0 }
 0x90b   :  { %701 = vrot.lane.b32.xlu0 %v700_v16, %s2357_s2 }
 0x97d   :  { %v702_v19 = vpop.permute.xlu0 %701 }
 0x97e   :  { %v704_v21 = vadd.f32 %v702_v19, %v2506_v20 }
 0x980   :  { %2174 = vtanh.f32 %v704_v21 }
 0x98a   :  { %v2175_v22 = vpop.eup %2174 }
 0x98b   :  { %v710_v24 = vsub.f32 %v2175_v22, %v708_v23 }
 0x98d   :  { %712 = vrot.lane.b32.xlu0 %v710_v24, %s2357_s2 }
 0x9ff   :  { %v713_v25 = vpop.permute.xlu0 %712 }
 0xa00   :  { %v715_v26 = vmul.f32 %v2173_v8, %v713_v25 }
 0xa02   :  { %v717_v27 = vrot.slane %v715_v26, 2 }
 0xa04   :  { %v719_v28 = vadd.f32 %v717_v27, %v536_v61 }
 0xa06   :  { %1928 = vmatmul.mubr.msk.f32.vlgmr.msra.gmra.mrb[6].mxu1 %vm185_vm2, %v719_v28  ;;  %v889_v38 = vrot.slane %v719_v28, 5 }
 0xa07   :  { %2093 = vmatpush3.bf16.msra.mxu1 %v2477_v5  ;;  %1949 = vmatprep.mubr.msk.f32.mxu1 %vm2354_vm0, %v2355_v1 }
 0xa08   :  { %2094 = vmatprep.subr.bf16.mxu1 %v2353_v0 }
 0xa0b   :  { %2096 = vmatpush3.bf16.msra.mxu1 %v2480_v10 }
 0xa0c   :  { %2103 = vmatprep.subr.bf16.mxu1 %v2353_v0 }
 0xad9   :  { %v789_v29 = vpop.f32.mrb[6].mxu1 }
 0xada   :  { %v794_v30 = vrot.slane %v789_v29, 5  ;;  %v1929_v31 = vpop.f32.mrb[7].mxu1 }
 0xadc   :  { %v796_v32 = vadd.f32 %v794_v30, %v2506_v20 }
 0xade   :  { %v1743_v33 = vmul.f32 -1.442695, %v796_v32 }
 0xae0   :  { %2176 = vpow2.f32 %v1743_v33 }
 0xaea   :  { %v2177_v34 = vpop.eup %2176 }
 0xaeb   :  { %v800_v35 = vadd.f32 1.0, %v2177_v34 }
 0xaed   :  { %2178 = vrcp.f32 %v800_v35 }
 0xaf7   :  { %v2179_v36 = vpop.eup %2178 }
 0xaf8   :  { %v804_v37 = vrot.slane %v2179_v36, 3 }
 0xafa   :  { %805 = vrot.lane.b32.xlu1 %v804_v37, %s2356_s12 }
 0xafe   :  { %890 = vrot.lane.b32.xlu1 %v889_v38, %s2357_s2 }
 0xb6c   :  { %v806_v39 = vpop.permute.xlu1 %805 }
 0xb6d   :  { %v808_v40 = vmul.f32 %v806_v39, %v719_v28 }
 0xb6f   :  { %1939 = vmatmul.mubr.msk.f32.vlgmr.msra.gmra.mrb[8].mxu0 %vm185_vm2, %v808_v40 }
 0xb70   :  { %2099 = vmatpush3.bf16.msra.mxu0 %v2495_v15  ;;  %1960 = vmatprep.mubr.msk.f32.mxu0 %vm2354_vm0, %v2355_v1  ;;  %v891_v47 = vpop.permute.xlu1 %890 }
 0xb71   :  { %2100 = vmatprep.subr.bf16.mxu0 %v2353_v0 }
 0xb74   :  { %2102 = vmatpush3.bf16.msra.mxu0 %v2498_v17 }
 0xb75   :  { %2109 = vmatprep.subr.bf16.mxu0 %v2353_v0 }
 0xc42   :  { %v878_v41 = vpop.f32.mrb[8].mxu0 }
 0xc43   :  { %v883_v42 = vrot.slane %v878_v41, 5  ;;  %v1940_v43 = vpop.f32.mrb[9].mxu0 }
 0xc45   :  { %884 = vrot.lane.b32.xlu0 %v883_v42, %s2357_s2 }
 0xcb7   :  { %v885_v44 = vpop.permute.xlu0 %884 }
 0xcb8   :  { %v887_v45 = vadd.f32 %v885_v44, %v2506_v20 }
 0xcba   :  { %2180 = vtanh.f32 %v887_v45 }
 0xcc4   :  { %v2181_v46 = vpop.eup %2180 }
 0xcc5   :  { %v893_v48 = vsub.f32 %v2181_v46, %v891_v47 }
 0xcc7   :  { %895 = vrot.lane.b32.xlu0 %v893_v48, %s2357_s2 }
 0xd39   :  { %v896_v49 = vpop.permute.xlu0 %895 }
 0xd3a   :  { %v898_v50 = vmul.f32 %v2179_v36, %v896_v49 }
 0xd3c   :  { %v900_v51 = vrot.slane %v898_v50, 3 }
 0xd3e   :  { %v902_v52 = vadd.f32 %v900_v51, %v719_v28 }
 0xd40   :  { %1950 = vmatmul.mubr.msk.f32.vlgmr.msra.gmra.mrb[8].mxu1 %vm185_vm2, %v902_v52  ;;  %v1072_v62 = vrot.slane %v902_v52, 4 }
 0xd41   :  { %2105 = vmatpush3.bf16.msra.mxu1 %v2477_v5  ;;  %1971 = vmatprep.mubr.msk.f32.mxu1 %vm2354_vm0, %v2355_v1 }
 0xd42   :  { %2106 = vmatprep.subr.bf16.mxu1 %v2353_v0 }
 0xd45   :  { %2108 = vmatpush3.bf16.msra.mxu1 %v2480_v10 }
 0xd46   :  { %2115 = vmatprep.subr.bf16.mxu1 %v2353_v0 }
 0xe13   :  { %v972_v53 = vpop.f32.mrb[8].mxu1 }
 0xe14   :  { %v977_v54 = vrot.slane %v972_v53, 4  ;;  %v1951_v55 = vpop.f32.mrb[9].mxu1 }
 0xe16   :  { %v979_v56 = vadd.f32 %v977_v54, %v2506_v20 }
 0xe18   :  { %v1746_v57 = vmul.f32 -1.442695, %v979_v56 }
 0xe1a   :  { %2182 = vpow2.f32 %v1746_v57 }
 0xe24   :  { %v2183_v58 = vpop.eup %2182 }
 0xe25   :  { %v983_v59 = vadd.f32 1.0, %v2183_v58 }
 0xe27   :  { %2184 = vrcp.f32 %v983_v59 }
 0xe31   :  { %v2185_v60 = vpop.eup %2184 }
 0xe32   :  { %v987_v61 = vrot.slane %v2185_v60, 4 }
 0xe34   :  { %988 = vrot.lane.b32.xlu1 %v987_v61, %s2356_s12 }
 0xe38   :  { %1073 = vrot.lane.b32.xlu1 %v1072_v62, %s2357_s2 }
 0xea6   :  { %v989_v63 = vpop.permute.xlu1 %988 }
 0xea7   :  { %v991_v2 = vmul.f32 %v989_v63, %v902_v52 }
 0xea9   :  { %1961 = vmatmul.mubr.msk.f32.vlgmr.msra.gmra.mrb[10].mxu0 %vm185_vm2, %v991_v2 }
 0xeaa   :  { %2111 = vmatpush3.bf16.msra.mxu0 %v2495_v15  ;;  %1982 = vmatprep.mubr.msk.f32.mxu0 %vm2354_vm0, %v2355_v1  ;;  %v1074_v11 = vpop.permute.xlu1 %1073 }
 0xeab   :  { %2112 = vmatprep.subr.bf16.mxu0 %v2353_v0 }
 0xeae   :  { %2114 = vmatpush3.bf16.msra.mxu0 %v2498_v17 }
 0xeaf   :  { %2121 = vmatprep.subr.bf16.mxu0 %v2353_v0 }
 0xf7c   :  { %v1061_v3 = vpop.f32.mrb[10].mxu0 }
 0xf7d   :  { %v1066_v4 = vrot.slane %v1061_v3, 4  ;;  %v1962_v6 = vpop.f32.mrb[11].mxu0 }
 0xf7f   :  { %1067 = vrot.lane.b32.xlu0 %v1066_v4, %s2357_s2 }
 0xff1   :  { %v1068_v7 = vpop.permute.xlu0 %1067 }
 0xff2   :  { %v1070_v8 = vadd.f32 %v1068_v7, %v2506_v20 }
 0xff4   :  { %2186 = vtanh.f32 %v1070_v8 }
 0xffe   :  { %v2187_v9 = vpop.eup %2186 }
 0xfff   :  { %v1076_v12 = vsub.f32 %v2187_v9, %v1074_v11 }
0x1001   :  { %1078 = vrot.lane.b32.xlu0 %v1076_v12, %s2357_s2 }
0x1073   :  { %v1079_v13 = vpop.permute.xlu0 %1078 }
0x1074   :  { %v1081_v14 = vmul.f32 %v2185_v60, %v1079_v13 }
0x1076   :  { %v1083_v16 = vrot.slane %v1081_v14, 4 }
0x1078   :  { %v1085_v18 = vadd.f32 %v1083_v16, %v902_v52 }
0x107a   :  { %1972 = vmatmul.mubr.msk.f32.vlgmr.msra.gmra.mrb[10].mxu1 %vm185_vm2, %v1085_v18  ;;  %v1255_v29 = vrot.slane %v1085_v18, 3 }
0x107b   :  { %2117 = vmatpush3.bf16.msra.mxu1 %v2477_v5  ;;  %1993 = vmatprep.mubr.msk.f32.mxu1 %vm2354_vm0, %v2355_v1 }
0x107c   :  { %2118 = vmatprep.subr.bf16.mxu1 %v2353_v0 }
0x107f   :  { %2120 = vmatpush3.bf16.msra.mxu1 %v2480_v10 }
0x1080   :  { %2127 = vmatprep.subr.bf16.mxu1 %v2353_v0 }
0x114d   :  { %v1155_v19 = vpop.f32.mrb[10].mxu1 }
0x114e   :  { %v1160_v21 = vrot.slane %v1155_v19, 3  ;;  %v1973_v22 = vpop.f32.mrb[11].mxu1 }
0x1150   :  { %v1162_v23 = vadd.f32 %v1160_v21, %v2506_v20 }
0x1152   :  { %v1749_v24 = vmul.f32 -1.442695, %v1162_v23  ;;  %v1636_v23 = vld [vmem:[#allocation10] sm:$0xff] }
0x1154   :  { %2188 = vpow2.f32 %v1749_v24  ;;  %v1637_v24 = vld [vmem:[#allocation10 + $0x8] sm:$0xff] }
0x115e   :  { %v2189_v25 = vpop.eup %2188 }
0x115f   :  { %v1166_v26 = vadd.f32 1.0, %v2189_v25  ;;  %v2140_v25 = vpack.c.bf16 %v1637_v24, %v1636_v23 }
0x1161   :  { %2190 = vrcp.f32 %v1166_v26  ;;  %v1638_v26 = vld [vmem:[#allocation10 + $0x10] sm:$0xff] }
0x116b   :  { %v2191_v27 = vpop.eup %2190 }
0x116c   :  { %v1170_v28 = vrot.slane %v2191_v27, 5 }
0x116e   :  { %1171 = vrot.lane.b32.xlu1 %v1170_v28, %s2356_s12 }
0x1172   :  { %1256 = vrot.lane.b32.xlu1 %v1255_v29, %s2357_s2 }
0x11e0   :  { %v1172_v30 = vpop.permute.xlu1 %1171 }
0x11e1   :  { %v1174_v31 = vmul.f32 %v1172_v30, %v1085_v18 }
0x11e3   :  { %1983 = vmatmul.mubr.msk.f32.vlgmr.msra.gmra.mrb[12].mxu0 %vm185_vm2, %v1174_v31 }
0x11e4   :  { %2123 = vmatpush3.bf16.msra.mxu0 %v2495_v15  ;;  %2004 = vmatprep.mubr.msk.f32.mxu0 %vm2354_vm0, %v2355_v1  ;;  %v1257_v38 = vpop.permute.xlu1 %1256 }
0x11e5   :  { %2124 = vmatprep.subr.bf16.mxu0 %v2353_v0 }
0x11e8   :  { %2126 = vmatpush3.bf16.msra.mxu0 %v2498_v17 }
0x11e9   :  { %2133 = vmatprep.subr.bf16.mxu0 %v2353_v0 }
0x12b6   :  { %v1244_v32 = vpop.f32.mrb[12].mxu0 }
0x12b7   :  { %v1249_v33 = vrot.slane %v1244_v32, 3  ;;  %v1984_v34 = vpop.f32.mrb[13].mxu0 }
0x12b9   :  { %1250 = vrot.lane.b32.xlu0 %v1249_v33, %s2357_s2 }
0x132b   :  { %v1251_v35 = vpop.permute.xlu0 %1250 }
0x132c   :  { %v1253_v36 = vadd.f32 %v1251_v35, %v2506_v20 }
0x132e   :  { %2192 = vtanh.f32 %v1253_v36 }
0x1338   :  { %v2193_v37 = vpop.eup %2192 }
0x1339   :  { %v1259_v39 = vsub.f32 %v2193_v37, %v1257_v38 }
0x133b   :  { %1261 = vrot.lane.b32.xlu0 %v1259_v39, %s2357_s2 }
0x13ad   :  { %v1262_v40 = vpop.permute.xlu0 %1261 }
0x13ae   :  { %v1264_v41 = vmul.f32 %v2191_v27, %v1262_v40  ;;  %v1639_v27 = vld [vmem:[#allocation10 + $0x18] sm:$0xff] }
0x13af   :  { %v2143_v28 = vpack.c.bf16 %v1639_v27, %v1638_v26 }
0x13b0   :  { %v1266_v42 = vrot.slane %v1264_v41, 5 }
0x13b2   :  { %v1268_v43 = vadd.f32 %v1266_v42, %v1085_v18 }
0x13b4   :  { %1994 = vmatmul.mubr.msk.f32.vlgmr.msra.gmra.mrb[12].mxu1 %vm185_vm2, %v1268_v43  ;;  %v1438_v52 = vrot.slane %v1268_v43, 2 }
0x13b5   :  { %2129 = vmatpush3.bf16.msra.mxu1 %v2477_v5  ;;  %2015 = vmatprep.mubr.msk.f32.mxu1 %vm2354_vm0, %v2355_v1 }
0x13b6   :  { %2130 = vmatprep.subr.bf16.mxu1 %v2353_v0 }
0x13b9   :  { %2132 = vmatpush3.bf16.msra.mxu1 %v2480_v10 }
0x13ba   :  { %2139 = vmatprep.subr.bf16.mxu1 %v2353_v0 }
0x1487   :  { %v1338_v44 = vpop.f32.mrb[12].mxu1 }
0x1488   :  { %v1343_v45 = vrot.slane %v1338_v44, 2  ;;  %v1995_v46 = vpop.f32.mrb[13].mxu1 }
0x148a   :  { %v1345_v47 = vadd.f32 %v1343_v45, %v2506_v20 }
0x148c   :  { %v1752_v48 = vmul.f32 -1.442695, %v1345_v47 }
0x148e   :  { %2194 = vpow2.f32 %v1752_v48 }
0x1498   :  { %v2195_v49 = vpop.eup %2194 }
0x1499   :  { %v1349_v50 = vadd.f32 1.0, %v2195_v49 }
0x149b   :  { %2196 = vrcp.f32 %v1349_v50 }
0x14a5   :  { %v2197_v5 = vpop.eup %2196 }
0x14a6   :  { %v1353_v51 = vrot.slane %v2197_v5, 6 }
0x14a8   :  { %1354 = vrot.lane.b32.xlu1 %v1353_v51, %s2356_s12 }
0x14ac   :  { %1439 = vrot.lane.b32.xlu1 %v1438_v52, %s2357_s2 }
0x151a   :  { %v1355_v10 = vpop.permute.xlu1 %1354 }
0x151b   :  { %v1357_v53 = vmul.f32 %v1355_v10, %v1268_v43 }
0x151d   :  { %2005 = vmatmul.mubr.msk.f32.vlgmr.msra.gmra.mrb[14].mxu0 %vm185_vm2, %v1357_v53 }
0x151e   :  { %2135 = vmatpush3.bf16.msra.mxu0 %v2495_v15  ;;  %2026 = vmatprep.mubr.msk.f32.mxu0 %vm2354_vm0, %v2355_v1  ;;  %v1440_v60 = vpop.permute.xlu1 %1439 }
0x151f   :  { %2136 = vmatprep.subr.bf16.mxu0 %v2353_v0 }
0x1522   :  { %2138 = vmatpush3.bf16.msra.mxu0 %v2498_v17 }
0x15f0   :  { %v1427_v54 = vpop.f32.mrb[14].mxu0 }
0x15f1   :  { %v1432_v55 = vrot.slane %v1427_v54, 2  ;;  %v2006_v56 = vpop.f32.mrb[15].mxu0 }
0x15f3   :  { %1433 = vrot.lane.b32.xlu0 %v1432_v55, %s2357_s2 }
0x1665   :  { %v1434_v57 = vpop.permute.xlu0 %1433 }
0x1666   :  { %v1436_v58 = vadd.f32 %v1434_v57, %v2506_v20 }
0x1668   :  { %2198 = vtanh.f32 %v1436_v58 }
0x1672   :  { %v2199_v59 = vpop.eup %2198 }
0x1673   :  { %v1442_v61 = vsub.f32 %v2199_v59, %v1440_v60 }
0x1675   :  { %1444 = vrot.lane.b32.xlu0 %v1442_v61, %s2357_s2 }
0x16e7   :  { %v1445_v15 = vpop.permute.xlu0 %1444 }
0x16e8   :  { %v1447_v62 = vmul.f32 %v2197_v5, %v1445_v15 }
0x16ea   :  { %v1449_v63 = vrot.slane %v1447_v62, 6 }
0x16ec   :  { %v1451_v2 = vadd.f32 %v1449_v63, %v1268_v43 }
0x16ee   :  { %2016 = vmatmul.mubr.msk.f32.vlgmr.msra.gmra.mrb[14].mxu1 %vm185_vm2, %v1451_v2  ;;  %v1621_v13 = vrot.slane %v1451_v2, 1 }
0x16ef   :  { %2037 = vmatprep.mubr.msk.f32.mxu1 %vm2354_vm0, %v2355_v1  ;;  %2141 = vmatpush3.bf16.msra.mxu1 %v2140_v25 }
0x16f0   :  { %2142 = vmatprep.subr.bf16.mxu1 %v2353_v0  ;;  %v1640_v0 = vld [vmem:[%s2672_s6] sm:$0x1] }
0x16f3   :  { %2144 = vmatpush3.bf16.msra.mxu1 %v2143_v28 }
0x17c1   :  { %v1521_v17 = vpop.f32.mrb[14].mxu1 }
0x17c2   :  { %v1526_v3 = vrot.slane %v1521_v17, 1  ;;  %v2017_v4 = vpop.f32.mrb[15].mxu1 }
0x17c4   :  { %v1528_v6 = vadd.f32 %v1526_v3, %v2506_v20 }
0x17c6   :  { %v1755_v7 = vmul.f32 -1.442695, %v1528_v6 }
0x17c8   :  { %2200 = vpow2.f32 %v1755_v7 }
0x17d2   :  { %v2201_v8 = vpop.eup %2200 }
0x17d3   :  { %v1532_v9 = vadd.f32 1.0, %v2201_v8 }
0x17d5   :  { %2202 = vrcp.f32 %v1532_v9 }
0x17df   :  { %v2203_v11 = vpop.eup %2202 }
0x17e0   :  { %v1536_v12 = vrot.slane %v2203_v11, 7 }
0x17e2   :  { %1537 = vrot.lane.b32.xlu1 %v1536_v12, %s2356_s12 }
0x17e6   :  { %1622 = vrot.lane.b32.xlu1 %v1621_v13, %s2357_s2 }
0x1854   :  { %v1538_v14 = vpop.permute.xlu1 %1537 }
0x1855   :  { %v1540_v16 = vmul.f32 %v1538_v14, %v1451_v2 }
0x1857   :  { %2027 = vmatmul.mubr.msk.f32.vlgmr.msra.gmra.mrb[16].mxu0 %vm185_vm2, %v1540_v16 }
0x1858   :  { %v1623_v30 = vpop.permute.xlu1 %1622 }
0x192a   :  { %v1610_v1 = vpop.f32.mrb[16].mxu0 }
0x192b   :  { %v1615_v18 = vrot.slane %v1610_v1, 1  ;;  %v2028_v19 = vpop.f32.mrb[17].mxu0 }
0x192d   :  { %1616 = vrot.lane.b32.xlu0 %v1615_v18, %s2357_s2 }
0x199f   :  { %v1617_v21 = vpop.permute.xlu0 %1616 }
0x19a0   :  { %v1619_v22 = vadd.f32 %v1617_v21, %v2506_v20 }
0x19a2   :  { %2204 = vtanh.f32 %v1619_v22 }
0x19ac   :  { %v2205_v29 = vpop.eup %2204 }
0x19ad   :  { %v1625_v31 = vsub.f32 %v2205_v29, %v1623_v30 }
0x19af   :  { %1627 = vrot.lane.b32.xlu0 %v1625_v31, %s2357_s2 }
0x1a21   :  { %v1628_v32 = vpop.permute.xlu0 %1627 }
0x1a22   :  { %v1630_v33 = vmul.f32 %v2203_v11, %v1628_v32 }
0x1a24   :  { %v1632_v34 = vrot.slane %v1630_v33, 7 }
0x1a26   :  { %v1634_v20 = vadd.f32 %v1632_v34, %v1451_v2 }
0x1a28   :  { %v1635_v35 = vmax.f32 %v1634_v20, 0.0 }
0x1a2a   :  { %2038 = vmatmul.mubr.msk.f32.vlgmr.msra.gmra.mrb[16].mxu1 %vm185_vm2, %v1635_v35 }
0x1afd   :  { %v1710_v36 = vpop.f32.mrb[16].mxu1 }
0x1afe   :  { %v1711_v37 = vadd.f32 %v1710_v36, %v1640_v0  ;;  %v2039_v38 = vpop.f32.mrb[17].mxu1 }
0x1b00   :  { %1714 = vst [vmem:[#allocation11] sm:$0x1] %v1711_v37 }
0x1b01   :  { %2327 = shalt.err (!%p2324_p2)
}
0x1b02   :  { %s2328_s24 = scalar_lea.hbm %s2673_s7, 16 }
0x1b03   :  { %p2329_p3 = scmp.ne.s32.totalorder %s2673_s7, %s2328_s24  ;;  %p2332_p4 = scmp.lt.u32.totalorder %s2328_s24, %s2673_s7 }
0x1b05   :  { %p2334_p5 = pnand %p2332_p4, %p2329_p3 }
0x1b07   :  { %2337 = shalt.err (!%p2334_p5)
}
0x1b08   :  { %1724 = dma.vmem_to_hbm [thread:$0]  %s1722_s19, 16, %s2673_s7, [#allocation4]  }
0x1b09   :  { %2344 = dma.done.wait [#allocation4], 16  }
0x1b0a   :  { %2345 = vsyncadd [#allocation4], 4294967280 }
0x1b0b   :  { %1728 = vsyncpa [#allocation3], 1 }
0x1b0c   :  { %1729 = vsyncpa [#allocation6], 1 }
0x1b0d   :  { %1730 = vsyncpa [#allocation9], 1 }
0x1b0e   :  { %1731 = vsyncpa [#allocation4], 1 }

</bundles_post_ra>
